<compile_context>
chip_gen: v7x
topology: tpu7x:2x2x1
jax: 0.10.0
libtpu: 0.0.40
codegen_flags: <defaults>
</compile_context>

<pallas_src>
import jax
import jax.numpy as jnp
from jax import lax
from jax.experimental import pallas as pl
from jax.experimental.pallas import tpu as pltpu


def _tile_padded_bytes(shape, dtype):
    """Bytes a block actually occupies in VMEM after (8, 128) tiling."""
    itemsize = jnp.dtype(dtype).itemsize
    dims = list(shape) if len(shape) >= 2 else [1] + list(shape)
    lead = 1
    for d in dims[:-2]:
        lead *= int(d)
    sub = -(-int(dims[-2]) // 8) * 8
    lane = -(-int(dims[-1]) // 128) * 128
    return lead * sub * lane * itemsize


def _vmem_capacity_bytes():
    try:
        return int(pltpu.get_tpu_info().vmem_capacity_bytes)
    except Exception:
        return 64 << 20  # conservative fallback (v7x per-TensorCore)


def cdc_conv(x_nchw, weight_oihw, bias, theta=0.7):
    """Central-difference conv. x:(N,Cin,H,W), weight:(Cout,Cin,3,3), bias:(Cout,).
    Returns (N, Cout, H, W)."""
    N, Cin, H, W = map(int, x_nchw.shape)
    Cout = int(weight_oihw.shape[0])
    HW = H * W
    PAD = W + 1                      # covers the most negative/positive tap shift
    EXT = HW + 2 * PAD
    K = 9 * Cin
    dt = x_nchw.dtype

    # --- Fold the central-difference term exactly into the parameters -------
    #   conv3x3_pad1(x, W, b) - theta*(conv1x1(x, W.sum(2,3)) + b)
    #     == conv3x3_pad1(x, W') + (1-theta)*b
    #   with W'[:,:,1,1] = W[:,:,1,1] - theta * W.sum(2,3).
    # The `theta - 0.0 < 1e-6` test replicates the PyTorch module exactly
    # (including its short-circuit behaviour for negative theta).
    if float(theta) - 0.0 < 1e-6:
        w_eff, b_eff = weight_oihw, bias
    else:
        kdiff = jnp.sum(weight_oihw, axis=(2, 3))
        w_eff = weight_oihw.at[:, :, 1, 1].add(-float(theta) * kdiff)
        b_eff = (1.0 - float(theta)) * bias

    # --- Layout prep: no input transpose, no jnp.pad, tiny weight reshape ---
    x_flat = x_nchw.reshape(N, Cin, HW)                      # metadata-only reshape
    # w2d[o, (kh*3+kw)*Cin + ci] = w_eff[o, ci, kh, kw]   (tap-major columns)
    w2d = jnp.transpose(w_eff, (0, 2, 3, 1)).reshape(Cout, K).astype(dt)
    b2d = b_eff.reshape(Cout, 1).astype(jnp.float32)

    def kernel(x_ref, w_ref, b_ref, o_ref, xext_ref, imcol_ref):
        # x_ref:     (N, Cin, HW)    NCHW-flat input, spatial on lanes
        # w_ref:     (Cout, 9*Cin)   theta-folded weights
        # b_ref:     (Cout, 1)       theta-folded bias (f32)
        # o_ref:     (N, Cout, HW)   NCHW-flat output
        # xext_ref:  (N, Cin, EXT)   flat input with W+1 zeros on each side
        # imcol_ref: (9*Cin, N*HW)   im2col matrix (matmul RHS)

        # Zero only the two pad strips, then drop the data in between.
        zpad = jnp.zeros((N, Cin, PAD), dtype=xext_ref.dtype)
        xext_ref[:, :, 0:PAD] = zpad
        xext_ref[:, :, PAD + HW:EXT] = zpad
        xext_ref[:, :, PAD:PAD + HW] = x_ref[...]

        # Lane masks for horizontal taps (w + dw must stay inside [0, W)).
        col_w = lax.broadcasted_iota(jnp.int32, (Cin, HW), 1) % W
        mask_l = col_w >= 1           # dw = -1
        mask_r = col_w <= W - 2       # dw = +1
        zero = jnp.zeros((Cin, HW), dtype=xext_ref.dtype)

        # Build im2col: 9 statically shifted (and masked) copies of each
        # flattened image.  Vertical out-of-range taps read the zero pad
        # strips; horizontal wrap-around is killed by the lane masks.
        for n in range(N):
            src = xext_ref[n]                              # (Cin, EXT)
            for kh in range(3):
                for kw in range(3):
                    dh, dw = kh - 1, kw - 1
                    start = PAD + dh * W + dw
                    patch = src[:, start:start + HW]       # (Cin, HW), static slice
                    if dw == -1:
                        patch = jnp.where(mask_l, patch, zero)
                    elif dw == 1:
                        patch = jnp.where(mask_r, patch, zero)
                    tap = kh * 3 + kw
                    imcol_ref[tap * Cin:(tap + 1) * Cin, n * HW:(n + 1) * HW] = patch

        # One MXU matmul (K = 9*Cin), output already (Cout, N*HW) lane-dense.
        acc = lax.dot_general(
            w_ref[...], imcol_ref[...],
            dimension_numbers=(((1,), (0,)), ((), ())),
            preferred_element_type=jnp.float32)
        acc = acc + b_ref[...]                             # (Cout, 1) lane-broadcast

        # Lane-aligned (multiples of HW) column slices -> per-image output blocks.
        for n in range(N):
            o_ref[n] = acc[:, n * HW:(n + 1) * HW].astype(o_ref.dtype)

    # --- VMEM budget: (8,128)-padding-aware, capped by this chip's capacity --
    need = (2 * (_tile_padded_bytes((N, Cin, HW), dt)
                 + _tile_padded_bytes((Cout, K), dt)
                 + _tile_padded_bytes((Cout, 1), jnp.float32)
                 + _tile_padded_bytes((N, Cout, HW), dt))
            + _tile_padded_bytes((N, Cin, EXT), dt)
            + _tile_padded_bytes((K, N * HW), dt)
            + (2 << 20))
    budget = max(_vmem_capacity_bytes() - (8 << 20), 16 << 20)
    vmem_limit = int(min(max(need, 16 << 20), budget))

    out_flat = pl.pallas_call(
        kernel,
        out_shape=jax.ShapeDtypeStruct((N, Cout, HW), dt),
        grid_spec=pltpu.PrefetchScalarGridSpec(
            num_scalar_prefetch=0,
            grid=(1,),                                     # single step: batch folded in
            in_specs=[
                pl.BlockSpec((N, Cin, HW), lambda i: (0, 0, 0)),
                pl.BlockSpec((Cout, K), lambda i: (0, 0)),
                pl.BlockSpec((Cout, 1), lambda i: (0, 0)),
            ],
            out_specs=pl.BlockSpec((N, Cout, HW), lambda i: (0, 0, 0)),
            scratch_shapes=[
                pltpu.VMEM((N, Cin, EXT), dt),
                pltpu.VMEM((K, N * HW), dt),
            ],
        ),
        compiler_params=pltpu.CompilerParams(
            dimension_semantics=("arbitrary",),
            vmem_limit_bytes=vmem_limit),
    )(x_flat, w2d, b2d)

    # Free metadata reshape back to NCHW.
    return out_flat.reshape(N, Cout, H, W)


def _reference(x_nchw, weight_oihw, bias, theta=0.7):
    dn = ("NCHW", "OIHW", "NCHW")
    norm_out = lax.conv_general_dilated(
        x_nchw, weight_oihw, window_strides=(1, 1), padding="SAME",
        dimension_numbers=dn) + bias[None, :, None, None]
    if theta - 0.0 < 1e-6:
        return norm_out
    kdiff = weight_oihw.sum(axis=(2, 3))[:, :, None, None]
    diff_out = lax.conv_general_dilated(
        x_nchw, kdiff, window_strides=(1, 1), padding="VALID",
        dimension_numbers=dn) + bias[None, :, None, None]
    return norm_out - theta * diff_out


if __name__ == "__main__":
    key = jax.random.PRNGKey(0)
    kx, kwgt, kb = jax.random.split(key, 3)

    N, Cin, Cout, H, W = 2, 4, 8, 16, 16

    x = jax.random.normal(kx, (N, Cin, H, W), dtype=jnp.float32)
    weight = jax.random.normal(kwgt, (Cout, Cin, 3, 3), dtype=jnp.float32) * 0.1
    bias = jax.random.normal(kb, (Cout,), dtype=jnp.float32) * 0.1

    for theta in (0.7, 0.0):
        out = jax.block_until_ready(cdc_conv(x, weight, bias, theta=theta))
        ref = jax.block_until_ready(_reference(x, weight, bias, theta=theta))
        assert out.shape == (N, Cout, H, W)
        assert jnp.allclose(out, ref, atol=1e-4, rtol=1e-4), f"mismatch (theta={theta})"

    print("KERNEL_OK")
</pallas_src>

<mosaic_0001>
module attributes {stable_mosaic.version = 11 : i64} {
  func.func @kernel(%arg0: i32, %arg1: memref<2x4x256xf32, #tpu.memory_space<vmem>>, %arg2: memref<8x36xf32, #tpu.memory_space<vmem>>, %arg3: memref<8x1xf32, #tpu.memory_space<vmem>>, %arg4: memref<2x8x256xf32, #tpu.memory_space<vmem>>, %arg5: memref<2x4x290xf32, #tpu.memory_space<vmem>>, %arg6: memref<36x512xf32, #tpu.memory_space<vmem>>) attributes {dimension_semantics = [#tpu.dimension_semantics<arbitrary>], iteration_bounds = array<i64: 1>, scalar_prefetch = 0 : i64, scratch_operands = 2 : i64, tpu.core_type = #tpu.core_type<tc>, window_params = [{pipeline_mode = #tpu.pipeline_mode<synchronous>, transform_indices = @transform_0, window_bounds = array<i64: 2, 4, 256>}, {pipeline_mode = #tpu.pipeline_mode<synchronous>, transform_indices = @transform_1, window_bounds = array<i64: 8, 36>}, {pipeline_mode = #tpu.pipeline_mode<synchronous>, transform_indices = @transform_2, window_bounds = array<i64: 8, 1>}, {pipeline_mode = #tpu.pipeline_mode<synchronous>, transform_indices = @transform_3, window_bounds = array<i64: 2, 8, 256>}]} {
    %cst = arith.constant 0.000000e+00 : f32
    %0 = vector.broadcast %cst : f32 to vector<2x4x17xf32>
    %c0 = arith.constant 0 : index
    %c0_0 = arith.constant 0 : index
    %c0_1 = arith.constant 0 : index
    %1 = vector.load %arg5[%c0, %c0_0, %c0_1] : memref<2x4x290xf32, #tpu.memory_space<vmem>>, vector<2x4x17xf32>
    tpu.vector_store %arg5[%c0, %c0_0, %c0_1], %0 {strides = array<i32>} : memref<2x4x290xf32, #tpu.memory_space<vmem>>, vector<2x4x17xf32>,
    %c0_2 = arith.constant 0 : index
    %c0_3 = arith.constant 0 : index
    %c273 = arith.constant 273 : index
    %2 = vector.load %arg5[%c0_2, %c0_3, %c273] : memref<2x4x290xf32, #tpu.memory_space<vmem>>, vector<2x4x17xf32>
    tpu.vector_store %arg5[%c0_2, %c0_3, %c273], %0 {strides = array<i32>} : memref<2x4x290xf32, #tpu.memory_space<vmem>>, vector<2x4x17xf32>,
    %c0_4 = arith.constant 0 : index
    %c0_5 = arith.constant 0 : index
    %c0_6 = arith.constant 0 : index
    %3 = vector.load %arg1[%c0_4, %c0_5, %c0_6] : memref<2x4x256xf32, #tpu.memory_space<vmem>>, vector<2x4x256xf32>
    %c0_7 = arith.constant 0 : index
    %c0_8 = arith.constant 0 : index
    %c17 = arith.constant 17 : index
    %4 = vector.load %arg5[%c0_7, %c0_8, %c17] : memref<2x4x290xf32, #tpu.memory_space<vmem>>, vector<2x4x256xf32>
    tpu.vector_store %arg5[%c0_7, %c0_8, %c17], %3 {strides = array<i32>} : memref<2x4x290xf32, #tpu.memory_space<vmem>>, vector<2x4x256xf32>,
    %5 = tpu.iota {dimensions = array<i32: 1>} : vector<4x256xi32>
    %c16_i32 = arith.constant 16 : i32
    %c0_i32 = arith.constant 0 : i32
    %6 = arith.cmpi eq, %c16_i32, %c0_i32 : i32
    %c1_i32 = arith.constant 1 : i32
    %7 = arith.select %6, %c1_i32, %c16_i32 : i32
    %8 = vector.broadcast %7 : i32 to vector<4x256xi32>
    %9 = arith.remsi %5, %8 : vector<4x256xi32>
    %c0_i32_9 = arith.constant 0 : i32
    %10 = vector.broadcast %c0_i32_9 : i32 to vector<4x256xi32>
    %11 = arith.cmpi ne, %9, %10 : vector<4x256xi32>
    %c0_i32_10 = arith.constant 0 : i32
    %12 = vector.broadcast %c0_i32_10 : i32 to vector<4x256xi32>
    %13 = arith.cmpi slt, %9, %12 : vector<4x256xi32>
    %c0_i32_11 = arith.constant 0 : i32
    %14 = arith.cmpi slt, %7, %c0_i32_11 : i32
    %15 = vector.broadcast %14 : i1 to vector<4x256xi1>
    %16 = vector.broadcast %15 : vector<4x256xi1> to vector<4x256xi1>
    %17 = arith.xori %13, %16 : vector<4x256xi1>
    %18 = arith.andi %17, %11 : vector<4x256xi1>
    %19 = vector.broadcast %7 : i32 to vector<4x256xi32>
    %20 = arith.addi %9, %19 : vector<4x256xi32>
    %21 = arith.select %18, %20, %9 : vector<4x256xi1>, vector<4x256xi32>
    %c1_i32_12 = arith.constant 1 : i32
    %22 = vector.broadcast %c1_i32_12 : i32 to vector<4x256xi32>
    %23 = arith.cmpi sge, %21, %22 : vector<4x256xi32>
    %c14_i32 = arith.constant 14 : i32
    %24 = vector.broadcast %c14_i32 : i32 to vector<4x256xi32>
    %25 = arith.cmpi sle, %21, %24 : vector<4x256xi32>
    %cst_13 = arith.constant 0.000000e+00 : f32
    %26 = vector.broadcast %cst_13 : f32 to vector<4x256xf32>
    %c0_14 = arith.constant 0 : index
    %c0_15 = arith.constant 0 : index
    %c0_16 = arith.constant 0 : index
    %27 = vector.load %arg5[%c0_14, %c0_15, %c0_16] : memref<2x4x290xf32, #tpu.memory_space<vmem>>, vector<1x4x290xf32>
    %28 = vector.shape_cast %27 : vector<1x4x290xf32> to vector<4x290xf32>
    %29 = vector.extract_strided_slice %28 {offsets = [0, 0], sizes = [4, 256], strides = [1, 1]} : vector<4x290xf32> to vector<4x256xf32>
    %30 = arith.select %23, %29, %26 : vector<4x256xi1>, vector<4x256xf32>
    %c0_17 = arith.constant 0 : index
    %c0_18 = arith.constant 0 : index
    %31 = vector.load %arg6[%c0_17, %c0_18] : memref<36x512xf32, #tpu.memory_space<vmem>>, vector<4x256xf32>
    tpu.vector_store %arg6[%c0_17, %c0_18], %30 {strides = array<i32>} : memref<36x512xf32, #tpu.memory_space<vmem>>, vector<4x256xf32>,
    %32 = vector.extract_strided_slice %28 {offsets = [0, 1], sizes = [4, 256], strides = [1, 1]} : vector<4x290xf32> to vector<4x256xf32>
    %c4 = arith.constant 4 : index
    %c0_19 = arith.constant 0 : index
    %33 = vector.load %arg6[%c4, %c0_19] : memref<36x512xf32, #tpu.memory_space<vmem>>, vector<4x256xf32>
    tpu.vector_store %arg6[%c4, %c0_19], %32 {strides = array<i32>} : memref<36x512xf32, #tpu.memory_space<vmem>>, vector<4x256xf32>,
    %34 = vector.extract_strided_slice %28 {offsets = [0, 2], sizes = [4, 256], strides = [1, 1]} : vector<4x290xf32> to vector<4x256xf32>
    %35 = arith.select %25, %34, %26 : vector<4x256xi1>, vector<4x256xf32>
    %c8 = arith.constant 8 : index
    %c0_20 = arith.constant 0 : index
    %36 = vector.load %arg6[%c8, %c0_20] : memref<36x512xf32, #tpu.memory_space<vmem>>, vector<4x256xf32>
    tpu.vector_store %arg6[%c8, %c0_20], %35 {strides = array<i32>} : memref<36x512xf32, #tpu.memory_space<vmem>>, vector<4x256xf32>,
    %37 = vector.extract_strided_slice %28 {offsets = [0, 16], sizes = [4, 256], strides = [1, 1]} : vector<4x290xf32> to vector<4x256xf32>
    %38 = arith.select %23, %37, %26 : vector<4x256xi1>, vector<4x256xf32>
    %c12 = arith.constant 12 : index
    %c0_21 = arith.constant 0 : index
    %39 = vector.load %arg6[%c12, %c0_21] : memref<36x512xf32, #tpu.memory_space<vmem>>, vector<4x256xf32>
    tpu.vector_store %arg6[%c12, %c0_21], %38 {strides = array<i32>} : memref<36x512xf32, #tpu.memory_space<vmem>>, vector<4x256xf32>,
    %40 = vector.extract_strided_slice %28 {offsets = [0, 17], sizes = [4, 256], strides = [1, 1]} : vector<4x290xf32> to vector<4x256xf32>
    %c16 = arith.constant 16 : index
    %c0_22 = arith.constant 0 : index
    %41 = vector.load %arg6[%c16, %c0_22] : memref<36x512xf32, #tpu.memory_space<vmem>>, vector<4x256xf32>
    tpu.vector_store %arg6[%c16, %c0_22], %40 {strides = array<i32>} : memref<36x512xf32, #tpu.memory_space<vmem>>, vector<4x256xf32>,
    %42 = vector.extract_strided_slice %28 {offsets = [0, 18], sizes = [4, 256], strides = [1, 1]} : vector<4x290xf32> to vector<4x256xf32>
    %43 = arith.select %25, %42, %26 : vector<4x256xi1>, vector<4x256xf32>
    %c20 = arith.constant 20 : index
    %c0_23 = arith.constant 0 : index
    %44 = vector.load %arg6[%c20, %c0_23] : memref<36x512xf32, #tpu.memory_space<vmem>>, vector<4x256xf32>
    tpu.vector_store %arg6[%c20, %c0_23], %43 {strides = array<i32>} : memref<36x512xf32, #tpu.memory_space<vmem>>, vector<4x256xf32>,
    %45 = vector.extract_strided_slice %28 {offsets = [0, 32], sizes = [4, 256], strides = [1, 1]} : vector<4x290xf32> to vector<4x256xf32>
    %46 = arith.select %23, %45, %26 : vector<4x256xi1>, vector<4x256xf32>
    %c24 = arith.constant 24 : index
    %c0_24 = arith.constant 0 : index
    %47 = vector.load %arg6[%c24, %c0_24] : memref<36x512xf32, #tpu.memory_space<vmem>>, vector<4x256xf32>
    tpu.vector_store %arg6[%c24, %c0_24], %46 {strides = array<i32>} : memref<36x512xf32, #tpu.memory_space<vmem>>, vector<4x256xf32>,
    %48 = vector.extract_strided_slice %28 {offsets = [0, 33], sizes = [4, 256], strides = [1, 1]} : vector<4x290xf32> to vector<4x256xf32>
    %c28 = arith.constant 28 : index
    %c0_25 = arith.constant 0 : index
    %49 = vector.load %arg6[%c28, %c0_25] : memref<36x512xf32, #tpu.memory_space<vmem>>, vector<4x256xf32>
    tpu.vector_store %arg6[%c28, %c0_25], %48 {strides = array<i32>} : memref<36x512xf32, #tpu.memory_space<vmem>>, vector<4x256xf32>,
    %50 = vector.extract_strided_slice %28 {offsets = [0, 34], sizes = [4, 256], strides = [1, 1]} : vector<4x290xf32> to vector<4x256xf32>
    %51 = arith.select %25, %50, %26 : vector<4x256xi1>, vector<4x256xf32>
    %c32 = arith.constant 32 : index
    %c0_26 = arith.constant 0 : index
    %52 = vector.load %arg6[%c32, %c0_26] : memref<36x512xf32, #tpu.memory_space<vmem>>, vector<4x256xf32>
    tpu.vector_store %arg6[%c32, %c0_26], %51 {strides = array<i32>} : memref<36x512xf32, #tpu.memory_space<vmem>>, vector<4x256xf32>,
    %c1 = arith.constant 1 : index
    %c0_27 = arith.constant 0 : index
    %c0_28 = arith.constant 0 : index
    %53 = vector.load %arg5[%c1, %c0_27, %c0_28] : memref<2x4x290xf32, #tpu.memory_space<vmem>>, vector<1x4x290xf32>
    %54 = vector.shape_cast %53 : vector<1x4x290xf32> to vector<4x290xf32>
    %55 = vector.extract_strided_slice %54 {offsets = [0, 0], sizes = [4, 256], strides = [1, 1]} : vector<4x290xf32> to vector<4x256xf32>
    %56 = arith.select %23, %55, %26 : vector<4x256xi1>, vector<4x256xf32>
    %c0_29 = arith.constant 0 : index
    %c256 = arith.constant 256 : index
    %57 = vector.load %arg6[%c0_29, %c256] : memref<36x512xf32, #tpu.memory_space<vmem>>, vector<4x256xf32>
    tpu.vector_store %arg6[%c0_29, %c256], %56 {strides = array<i32>} : memref<36x512xf32, #tpu.memory_space<vmem>>, vector<4x256xf32>,
    %58 = vector.extract_strided_slice %54 {offsets = [0, 1], sizes = [4, 256], strides = [1, 1]} : vector<4x290xf32> to vector<4x256xf32>
    %c4_30 = arith.constant 4 : index
    %c256_31 = arith.constant 256 : index
    %59 = vector.load %arg6[%c4_30, %c256_31] : memref<36x512xf32, #tpu.memory_space<vmem>>, vector<4x256xf32>
    tpu.vector_store %arg6[%c4_30, %c256_31], %58 {strides = array<i32>} : memref<36x512xf32, #tpu.memory_space<vmem>>, vector<4x256xf32>,
    %60 = vector.extract_strided_slice %54 {offsets = [0, 2], sizes = [4, 256], strides = [1, 1]} : vector<4x290xf32> to vector<4x256xf32>
    %61 = arith.select %25, %60, %26 : vector<4x256xi1>, vector<4x256xf32>
    %c8_32 = arith.constant 8 : index
    %c256_33 = arith.constant 256 : index
    %62 = vector.load %arg6[%c8_32, %c256_33] : memref<36x512xf32, #tpu.memory_space<vmem>>, vector<4x256xf32>
    tpu.vector_store %arg6[%c8_32, %c256_33], %61 {strides = array<i32>} : memref<36x512xf32, #tpu.memory_space<vmem>>, vector<4x256xf32>,
    %63 = vector.extract_strided_slice %54 {offsets = [0, 16], sizes = [4, 256], strides = [1, 1]} : vector<4x290xf32> to vector<4x256xf32>
    %64 = arith.select %23, %63, %26 : vector<4x256xi1>, vector<4x256xf32>
    %c12_34 = arith.constant 12 : index
    %c256_35 = arith.constant 256 : index
    %65 = vector.load %arg6[%c12_34, %c256_35] : memref<36x512xf32, #tpu.memory_space<vmem>>, vector<4x256xf32>
    tpu.vector_store %arg6[%c12_34, %c256_35], %64 {strides = array<i32>} : memref<36x512xf32, #tpu.memory_space<vmem>>, vector<4x256xf32>,
    %66 = vector.extract_strided_slice %54 {offsets = [0, 17], sizes = [4, 256], strides = [1, 1]} : vector<4x290xf32> to vector<4x256xf32>
    %c16_36 = arith.constant 16 : index
    %c256_37 = arith.constant 256 : index
    %67 = vector.load %arg6[%c16_36, %c256_37] : memref<36x512xf32, #tpu.memory_space<vmem>>, vector<4x256xf32>
    tpu.vector_store %arg6[%c16_36, %c256_37], %66 {strides = array<i32>} : memref<36x512xf32, #tpu.memory_space<vmem>>, vector<4x256xf32>,
    %68 = vector.extract_strided_slice %54 {offsets = [0, 18], sizes = [4, 256], strides = [1, 1]} : vector<4x290xf32> to vector<4x256xf32>
    %69 = arith.select %25, %68, %26 : vector<4x256xi1>, vector<4x256xf32>
    %c20_38 = arith.constant 20 : index
    %c256_39 = arith.constant 256 : index
    %70 = vector.load %arg6[%c20_38, %c256_39] : memref<36x512xf32, #tpu.memory_space<vmem>>, vector<4x256xf32>
    tpu.vector_store %arg6[%c20_38, %c256_39], %69 {strides = array<i32>} : memref<36x512xf32, #tpu.memory_space<vmem>>, vector<4x256xf32>,
    %71 = vector.extract_strided_slice %54 {offsets = [0, 32], sizes = [4, 256], strides = [1, 1]} : vector<4x290xf32> to vector<4x256xf32>
    %72 = arith.select %23, %71, %26 : vector<4x256xi1>, vector<4x256xf32>
    %c24_40 = arith.constant 24 : index
    %c256_41 = arith.constant 256 : index
    %73 = vector.load %arg6[%c24_40, %c256_41] : memref<36x512xf32, #tpu.memory_space<vmem>>, vector<4x256xf32>
    tpu.vector_store %arg6[%c24_40, %c256_41], %72 {strides = array<i32>} : memref<36x512xf32, #tpu.memory_space<vmem>>, vector<4x256xf32>,
    %74 = vector.extract_strided_slice %54 {offsets = [0, 33], sizes = [4, 256], strides = [1, 1]} : vector<4x290xf32> to vector<4x256xf32>
    %c28_42 = arith.constant 28 : index
    %c256_43 = arith.constant 256 : index
    %75 = vector.load %arg6[%c28_42, %c256_43] : memref<36x512xf32, #tpu.memory_space<vmem>>, vector<4x256xf32>
    tpu.vector_store %arg6[%c28_42, %c256_43], %74 {strides = array<i32>} : memref<36x512xf32, #tpu.memory_space<vmem>>, vector<4x256xf32>,
    %76 = vector.extract_strided_slice %54 {offsets = [0, 34], sizes = [4, 256], strides = [1, 1]} : vector<4x290xf32> to vector<4x256xf32>
    %77 = arith.select %25, %76, %26 : vector<4x256xi1>, vector<4x256xf32>
    %c32_44 = arith.constant 32 : index
    %c256_45 = arith.constant 256 : index
    %78 = vector.load %arg6[%c32_44, %c256_45] : memref<36x512xf32, #tpu.memory_space<vmem>>, vector<4x256xf32>
    tpu.vector_store %arg6[%c32_44, %c256_45], %77 {strides = array<i32>} : memref<36x512xf32, #tpu.memory_space<vmem>>, vector<4x256xf32>,
    %c0_46 = arith.constant 0 : index
    %c0_47 = arith.constant 0 : index
    %79 = vector.load %arg2[%c0_46, %c0_47] : memref<8x36xf32, #tpu.memory_space<vmem>>, vector<8x36xf32>
    %c0_48 = arith.constant 0 : index
    %c0_49 = arith.constant 0 : index
    %80 = vector.load %arg6[%c0_48, %c0_49] : memref<36x512xf32, #tpu.memory_space<vmem>>, vector<36x512xf32>
    %cst_50 = arith.constant dense<0.000000e+00> : vector<8x512xf32>
    %81 = tpu.matmul %79, %80, %cst_50 {dimension_numbers = #tpu.dot_dimension_numbers<[1], [0], [0], [1], [0, 0, 1, 1], [], []>} : vector<8x36xf32>, vector<36x512xf32>, vector<8x512xf32> -> vector<8x512xf32>
    %c0_51 = arith.constant 0 : index
    %c0_52 = arith.constant 0 : index
    %82 = vector.load %arg3[%c0_51, %c0_52] : memref<8x1xf32, #tpu.memory_space<vmem>>, vector<8x1xf32>
    %83 = vector.broadcast %82 : vector<8x1xf32> to vector<8x512xf32>
    %84 = arith.addf %81, %83 : vector<8x512xf32>
    %85 = vector.extract_strided_slice %84 {offsets = [0, 0], sizes = [8, 256], strides = [1, 1]} : vector<8x512xf32> to vector<8x256xf32>
    %c0_53 = arith.constant 0 : index
    %c0_54 = arith.constant 0 : index
    %c0_55 = arith.constant 0 : index
    %86 = vector.load %arg4[%c0_53, %c0_54, %c0_55] : memref<2x8x256xf32, #tpu.memory_space<vmem>>, vector<1x8x256xf32>
    %87 = vector.shape_cast %86 : vector<1x8x256xf32> to vector<8x256xf32>
    %88 = vector.shape_cast %85 : vector<8x256xf32> to vector<1x8x256xf32>
    tpu.vector_store %arg4[%c0_53, %c0_54, %c0_55], %88 {strides = array<i32>} : memref<2x8x256xf32, #tpu.memory_space<vmem>>, vector<1x8x256xf32>,
    %89 = vector.extract_strided_slice %84 {offsets = [0, 256], sizes = [8, 256], strides = [1, 1]} : vector<8x512xf32> to vector<8x256xf32>
    %c1_56 = arith.constant 1 : index
    %c0_57 = arith.constant 0 : index
    %c0_58 = arith.constant 0 : index
    %90 = vector.load %arg4[%c1_56, %c0_57, %c0_58] : memref<2x8x256xf32, #tpu.memory_space<vmem>>, vector<1x8x256xf32>
    %91 = vector.shape_cast %90 : vector<1x8x256xf32> to vector<8x256xf32>
    %92 = vector.shape_cast %89 : vector<8x256xf32> to vector<1x8x256xf32>
    tpu.vector_store %arg4[%c1_56, %c0_57, %c0_58], %92 {strides = array<i32>} : memref<2x8x256xf32, #tpu.memory_space<vmem>>, vector<1x8x256xf32>,
    return
  }
  func.func @transform_0(%arg0: i32) -> (i32, i32, i32) {
    %c0_i32 = arith.constant 0 : i32
    %c0_i32_0 = arith.constant 0 : i32
    %c0_i32_1 = arith.constant 0 : i32
    %c0_i32_2 = arith.constant 0 : i32
    return %c0_i32, %c0_i32_0, %c0_i32_1 : i32, i32, i32
  }
  func.func @transform_1(%arg0: i32) -> (i32, i32) {
    %c0_i32 = arith.constant 0 : i32
    %c0_i32_0 = arith.constant 0 : i32
    %c0_i32_1 = arith.constant 0 : i32
    return %c0_i32, %c0_i32_0 : i32, i32
  }
  func.func @transform_2(%arg0: i32) -> (i32, i32) {
    %c0_i32 = arith.constant 0 : i32
    %c0_i32_0 = arith.constant 0 : i32
    %c0_i32_1 = arith.constant 0 : i32
    return %c0_i32, %c0_i32_0 : i32, i32
  }
  func.func @transform_3(%arg0: i32) -> (i32, i32, i32) {
    %c0_i32 = arith.constant 0 : i32
    %c0_i32_0 = arith.constant 0 : i32
    %c0_i32_1 = arith.constant 0 : i32
    %c0_i32_2 = arith.constant 0 : i32
    return %c0_i32, %c0_i32_0, %c0_i32_1 : i32, i32, i32
  }
}

</mosaic_0001>

<bundles_post_ra>
// kernel: tpu_custom_call.1
= control target key start
LH: loop header
LB: loop body
LE: loop exit
PB: predicated region body
PF: predicated region fallthrough
CT: control target
= control target key end

     0   :  { %8 = vsyncpa [#allocation5], 0  ;;  %s961_s0 = inlined_call_operand.hbm [shape: f32[2,4,256], index: 0, kind: input, shape index: {}]   ;;  %s962_s1 = inlined_call_operand.vmem [shape: f32[8,36], index: 1, kind: input, shape index: {}]   ;;  %s963_s2 = inlined_call_operand.vmem [shape: f32[8,1], index: 2, kind: input, shape index: {}]   ;;  %s964_s3 = inlined_call_operand.hbm [shape: f32[2,8,256], index: 3, kind: output, shape index: {}]  }
   0x1   :  { %9 = vsyncpa [#allocation6], 0  ;;  %s661_s12 = smov [#allocation4]   ;;  %s613_s16 = scalar_lea.hbm %s961_s0, 256 }
   0x2   :  { %s15_s13 = sshll.u32 %s661_s12, 4  ;;  %p614_p0 = scmp.ne.s32.totalorder %s961_s0, %s613_s16  ;;  %s16_s13 = int_to_ptr.vmem [resolvable:$true] %s15_s13 }
   0x3   :  { %p617_p1 = scmp.lt.u32.totalorder %s613_s16, %s961_s0 }
   0x5   :  { %p619_p2 = pnand %p617_p1, %p614_p0 }
   0x7   :  { %622 = shalt.err (!%p619_p2)
}
   0x8   :  { %s623_s21 = scalar_lea.vmem %s16_s13, 256  ;;  %p628_p4 = scmp.lt.s32.totalorder %s16_s13, %s16_s13 }
   0x9   :  { %p624_p3 = scmp.ne.s32.totalorder %s16_s13, %s623_s21  ;;  %p629_p5 = scmp.lt.s32.totalorder %s623_s21, %s623_s21 }
   0xb   :  { %p630_p6 = por %p629_p5, %p628_p4 }
   0xd   :  { %p631_p7 = pnand %p630_p6, %p624_p3 }
   0xf   :  { %634 = shalt.err (!%p631_p7)
}
  0x10   :  { %s662_s22 = smov 128   ;;  %s663_s23 = smov 8  }
  0x11   :  { %21 = dma.hbm_to_vmem [thread:$0]  %s961_s0, 256, %s16_s13, [#allocation5], %s662_s22, %s662_s22, %s663_s23  }
  0x12   :  { %657 = dma.done.wait [#allocation5], 256  }
  0x13   :  { %658 = vsyncadd [#allocation5], 4294967040  ;;  %vm29_vm0 = vcmask 134144   ;;  %vm32_vm1 = vcmask 273544   ;;  %v664_v0 = vmov 0.0   ;;  %v35_v1 = vld [vmem:[#allocation4] sm:$0xff]  ;;  %v59_v3 = vlaneseq }
  0x14   :  { %30 = vst.msk [vmem:[#allocation2] sm:$0xf] %vm29_vm0, %v664_v0  ;;  %31 = vst.msk [vmem:[#allocation2 + $0xc] sm:$0xf] %vm29_vm0, %v664_v0  ;;  %467 = vmatprep.mubr.f32.mxu0 %v664_v0  ;;  %538 = vmatprep.mubr.f32.mxu1 %v664_v0  ;;  %s665_s26 = smov 17   ;;  %v36_v2 = vld [vmem:[#allocation4 + $0x8] sm:$0xff] }
  0x15   :  { %33 = vst.msk [vmem:[#allocation2 + $0x8] sm:$0xf] %vm32_vm1, %v664_v0  ;;  %34 = vst.msk [vmem:[#allocation2 + $0x14] sm:$0xf] %vm32_vm1, %v664_v0  ;;  %39 = vrot.lane.b32.xlu0 %v35_v1, %s665_s26  ;;  %vm52_vm2 = vcmask 1043592   ;;  %vm53_vm3 = vcmask 1047556  }
  0x16   :  { %v712_v4 = vand.u32 127, %v59_v3  ;;  %vm45_vm4 = vcmask 138240   ;;  %vm54_vm5 = vmor %vm53_vm3, %vm52_vm2  ;;  %s666_s0 = smov 110   ;;  %s667_s27 = smov 112   ;;  %v380_v30 = vld [vmem:[%s963_s2] sm:$0xff]  ;;  %v674_v31 = vmov 0  }
  0x17   :  { %s668_s28 = smov 111   ;;  %s669_s29 = smov 126   ;;  %606 = vset.pattern.permute.xlu0 %v674_v31  ;;  %vm108_vm8 = vcmask 1039360   ;;  %vm136_vm9 = vcmask 916480   ;;  %vm206_vm10 = vcmask 777216   ;;  %vm121_vm11 = vcmask 1031168  }
  0x18   :  { %v716_v8 = vadd.s32 128, %v712_v4  ;;  %v66_v11 = vand.u32 15, %v712_v4  ;;  %s670_s30 = smov 127   ;;  %s671_s4 = smov 96   ;;  %vm170_vm14 = vcmask 900096   ;;  %vm191_vm15 = vcmask 785408  }
  0x19   :  { %41 = vrot.lane.b32.xlu0 %v36_v2, %s665_s26  ;;  %s672_s5 = smov 95   ;;  %s673_s6 = smov 94   ;;  %vm219_vm1 = vcmask 769024   ;;  %vm390_vm2 = vcmask 1043456   ;;  %v359_v2 = vld [vmem:[%s962_s1] sm:$0xff]  ;;  %vm386_vm3 = vcmask 293888  }
  0x1a   :  { %v73_v13 = vand.u32 15, %v716_v8  ;;  %vm723_vm6 = vcmp.ge.s32.totalorder %v66_v11, 1  ;;  %vm847_vm12 = vcmp.le.s32.totalorder %v66_v11, 14  ;;  %s675_s1 = smov [#allocation7]  }
  0x1b   :  { %s555_s10 = sshll.u32 %s675_s1, 4  ;;  %s556_s10 = int_to_ptr.vmem [resolvable:$true] %s555_s10 }
  0x1c   :  { %vm733_vm7 = vcmp.ge.s32.totalorder %v73_v13, 1  ;;  %vm853_vm13 = vcmp.le.s32.totalorder %v73_v13, 14  ;;  %s635_s11 = scalar_lea.vmem %s556_s10, 512  ;;  %p640_p9 = scmp.lt.s32.totalorder %s556_s10, %s556_s10 }
  0x1d   :  { %p636_p8 = scmp.ne.s32.totalorder %s556_s10, %s635_s11  ;;  %p641_p10 = scmp.lt.s32.totalorder %s635_s11, %s635_s11 }
  0x1f   :  { %p642_p11 = por %p641_p10, %p640_p9 }
  0x21   :  { %p643_p12 = pnand %p642_p11, %p636_p8 }
  0x87   :  { %v40_v5 = vpop.permute.xlu0 %39 }
  0x88   :  { %v43_v6 = vrot.slane %v40_v5, 4 }
  0x8a   :  { %v46_v7 = vsel %vm45_vm4, %v43_v6, %v40_v5  ;;  %56 = vst.msk [vmem:[#allocation2 + $0x8] sm:$0xf] %vm29_vm0, %v43_v6 }
  0x8b   :  { %55 = vst.msk [vmem:[#allocation2] sm:$0xff] %vm54_vm5, %v46_v7  ;;  %v42_v9 = vpop.permute.xlu0 %41 }
  0x8c   :  { %v44_v10 = vrot.slane %v42_v9, 4 }
  0x8e   :  { %v47_v12 = vsel %vm45_vm4, %v44_v10, %v42_v9  ;;  %58 = vst.msk [vmem:[#allocation2 + $0x14] sm:$0xf] %vm29_vm0, %v44_v10  ;;  %vm157_vm0 = vcmask 908288  }
  0x8f   :  { %57 = vst.msk [vmem:[#allocation2 + $0xc] sm:$0xff] %vm54_vm5, %v47_v12 }
  0x91   :  { %v91_v15 = vld [vmem:[#allocation2 + $0x8] sm:$0xf] }
  0x92   :  { %168 = vrot.lane.b32.xlu0 %v91_v15, %s666_s0  ;;  %134 = vrot.lane.b32.xlu1 %v91_v15, %s667_s27  ;;  %v729_v16 = vld [vmem:[#allocation2] sm:$0xff]  ;;  %v101_v27 = vcombine.low %v91_v15, %v91_v15 }
  0x93   :  { %v93_v18 = vcombine.high %v729_v16, %v729_v16  ;;  %v95_v19 = vsel %vm723_vm6, %v729_v16, 0.0  ;;  %v100_v28 = vcombine.low %v729_v16, %v729_v16 }
  0x94   :  { %97 = vst [vmem:[#allocation3] sm:$0xf] %v95_v19 }
  0x95   :  { %v230_v20 = vld [vmem:[#allocation2 + $0x14] sm:$0xf]  ;;  %v96_v21 = vsel %vm733_vm7, %v93_v18, 0.0 }
  0x96   :  { %291 = vrot.lane.b32.xlu0 %v230_v20, %s668_s28  ;;  %271 = vrot.lane.b32.xlu1 %v230_v20, %s667_s27  ;;  %v229_v22 = vld [vmem:[#allocation2 + $0xc] sm:$0xff]  ;;  %98 = vst [vmem:[#allocation3 + $0x8] sm:$0xf] %v96_v21  ;;  %v240_v26 = vcombine.low %v230_v20, %v230_v20 }
  0x97   :  { %v232_v23 = vcombine.high %v229_v22, %v229_v22  ;;  %v234_v24 = vsel %vm723_vm6, %v229_v22, 0.0  ;;  %v239_v29 = vcombine.low %v229_v22, %v229_v22 }
  0x98   :  { %236 = vst [vmem:[#allocation3 + $0x10] sm:$0xf] %v234_v24 }
  0x99   :  { %v235_v25 = vsel %vm733_vm7, %v232_v23, 0.0 }
  0x9a   :  { %119 = vrot.lane.b32.xlu1 %v91_v15, %s669_s29  ;;  %130 = vrot.lane.b32.xlu0 %v729_v16, %s667_s27  ;;  %237 = vst [vmem:[#allocation3 + $0x18] sm:$0xf] %v235_v25 }
  0x9e   :  { %257 = vrot.lane.b32.xlu1 %v230_v20, %s669_s29  ;;  %104 = vrot.lane.b32.xlu0 %v729_v16, %s670_s30 }
  0xa2   :  { %303 = vrot.lane.b32.xlu1 %v230_v20, %s666_s0  ;;  %115 = vrot.lane.b32.xlu0 %v729_v16, %s669_s29 }
  0xa6   :  { %189 = vrot.lane.b32.xlu1 %v91_v15, %s671_s4  ;;  %164 = vrot.lane.b32.xlu0 %v729_v16, %s666_s0 }
  0xaa   :  { %323 = vrot.lane.b32.xlu1 %v230_v20, %s671_s4  ;;  %185 = vrot.lane.b32.xlu0 %v729_v16, %s671_s4 }
  0xae   :  { %155 = vrot.lane.b32.xlu1 %v91_v15, %s668_s28  ;;  %335 = vrot.lane.b32.xlu0 %v229_v22, %s672_s5 }
  0xb2   :  { %217 = vrot.lane.b32.xlu1 %v91_v15, %s673_s6  ;;  %151 = vrot.lane.b32.xlu0 %v729_v16, %s668_s28 }
  0xb6   :  { %267 = vrot.lane.b32.xlu1 %v229_v22, %s667_s27  ;;  %287 = vrot.lane.b32.xlu0 %v229_v22, %s668_s28 }
  0xba   :  { %243 = vrot.lane.b32.xlu1 %v229_v22, %s670_s30  ;;  %245 = vrot.lane.b32.xlu0 %v240_v26, %s670_s30 }
  0xbe   :  { %253 = vrot.lane.b32.xlu1 %v229_v22, %s669_s29  ;;  %204 = vrot.lane.b32.xlu0 %v101_v27, %s672_s5 }
  0xc2   :  { %299 = vrot.lane.b32.xlu1 %v229_v22, %s666_s0  ;;  %269 = vrot.lane.b32.xlu0 %v232_v23, %s667_s27 }
  0xc6   :  { %202 = vrot.lane.b32.xlu1 %v729_v16, %s672_s5  ;;  %117 = vrot.lane.b32.xlu0 %v93_v18, %s669_s29 }
  0xca   :  { %319 = vrot.lane.b32.xlu1 %v229_v22, %s671_s4  ;;  %255 = vrot.lane.b32.xlu0 %v232_v23, %s669_s29 }
  0xce   :  { %106 = vrot.lane.b32.xlu1 %v101_v27, %s670_s30  ;;  %102 = vrot.lane.b32.xlu0 %v100_v28, %s670_s30 }
  0xd2   :  { %337 = vrot.lane.b32.xlu1 %v240_v26, %s672_s5  ;;  %301 = vrot.lane.b32.xlu0 %v232_v23, %s666_s0 }
  0xd6   :  { %187 = vrot.lane.b32.xlu0 %v93_v18, %s671_s4  ;;  %132 = vrot.lane.b32.xlu1 %v93_v18, %s667_s27 }
  0xda   :  { %321 = vrot.lane.b32.xlu0 %v232_v23, %s671_s4  ;;  %166 = vrot.lane.b32.xlu1 %v93_v18, %s666_s0 }
  0xde   :  { %153 = vrot.lane.b32.xlu0 %v93_v18, %s668_s28  ;;  %241 = vrot.lane.b32.xlu1 %v239_v29, %s670_s30 }
  0xe2   :  { %215 = vrot.lane.b32.xlu0 %v93_v18, %s673_s6  ;;  %289 = vrot.lane.b32.xlu1 %v232_v23, %s668_s28 }
  0xe6   :  { %347 = vrot.lane.b32.xlu0 %v232_v23, %s673_s6  ;;  %200 = vrot.lane.b32.xlu1 %v100_v28, %s672_s5 }
  0xea   :  { %213 = vrot.lane.b32.xlu0 %v729_v16, %s673_s6  ;;  %333 = vrot.lane.b32.xlu1 %v239_v29, %s672_s5 }
  0xee   :  { %349 = vrot.lane.b32.xlu1 %v230_v20, %s673_s6  ;;  %383 = vperm.xlu0 %606, %v380_v30  }
  0xf2   :  { %345 = vrot.lane.b32.xlu1 %v229_v22, %s673_s6 }
 0x104   :  { %v807_v32 = vpop.permute.xlu0 %168  ;;  %v809_v33 = vpop.permute.xlu1 %134 }
 0x108   :  { %v811_v34 = vpop.permute.xlu0 %291  ;;  %v272_v35 = vpop.permute.xlu1 %271 }
 0x10c   :  { %v120_v36 = vpop.permute.xlu1 %119  ;;  %v813_v37 = vpop.permute.xlu0 %130 }
 0x110   :  { %v258_v38 = vpop.permute.xlu1 %257  ;;  %v105_v39 = vpop.permute.xlu0 %104 }
 0x114   :  { %v815_v40 = vpop.permute.xlu1 %303  ;;  %v116_v41 = vpop.permute.xlu0 %115 }
 0x118   :  { %v817_v42 = vpop.permute.xlu1 %189  ;;  %v819_v43 = vpop.permute.xlu0 %164 }
 0x11c   :  { %v821_v44 = vpop.permute.xlu1 %323  ;;  %v823_v45 = vpop.permute.xlu0 %185 }
 0x120   :  { %v825_v46 = vpop.permute.xlu1 %155  ;;  %v827_v47 = vpop.permute.xlu0 %335 }
 0x124   :  { %v829_v48 = vpop.permute.xlu1 %217  ;;  %v831_v49 = vpop.permute.xlu0 %151 }
 0x128   :  { %v268_v50 = vpop.permute.xlu1 %267  ;;  %v833_v51 = vpop.permute.xlu0 %287 }
 0x12c   :  { %v835_v52 = vpop.permute.xlu1 %243  ;;  %v246_v53 = vpop.permute.xlu0 %245 }
 0x12d   :  { %v248_v54 = vsel %vm108_vm8, %v835_v52, %v246_v53 }
 0x12e   :  { %252 = vst [vmem:[#allocation3 + $0x18] sm:$0xf0] %v248_v54 }
 0x130   :  { %v254_v55 = vpop.permute.xlu1 %253  ;;  %v205_v56 = vpop.permute.xlu0 %204 }
 0x134   :  { %v300_v57 = vpop.permute.xlu1 %299  ;;  %v270_v58 = vpop.permute.xlu0 %269 }
 0x135   :  { %v273_v59 = vsel %vm136_vm9, %v268_v50, %v270_v58  ;;  %v274_v60 = vsel %vm136_vm9, %v270_v58, %v272_v35  ;;  %v363_v29 = vld [vmem:[#allocation3 + $0x18] sm:$0xff] }
 0x136   :  { %v277_v61 = vsel %vm723_vm6, %v273_v59, 0.0  ;;  %v278_v62 = vsel %vm733_vm7, %v274_v60, 0.0 }
 0x137   :  { %v281_v63 = vrot.slane %v277_v61, 4  ;;  %v282_v0 = vrot.slane %v278_v62, 4 }
 0x138   :  { %v857_v3 = vpop.permute.xlu1 %202  ;;  %v118_v5 = vpop.permute.xlu0 %117 }
 0x139   :  { %285 = vst [vmem:[#allocation3 + $0x30] sm:$0xf0] %v281_v63  ;;  %286 = vst [vmem:[#allocation3 + $0x38] sm:$0xf0] %v282_v0  ;;  %v208_v6 = vsel %vm206_vm10, %v857_v3, %v205_v56  ;;  %v122_v4 = vsel %vm121_vm11, %v116_v41, %v118_v5  ;;  %v123_v7 = vsel %vm121_vm11, %v118_v5, %v120_v36 }
 0x13a   :  { %212 = vst [vmem:[#allocation3 + $0x68] sm:$0xf0] %v208_v6  ;;  %v126_v8 = vsel %vm847_vm12, %v122_v4, 0.0  ;;  %v127_v9 = vsel %vm853_vm13, %v123_v7, 0.0 }
 0x13b   :  { %128 = vst [vmem:[#allocation3 + $0x20] sm:$0xf] %v126_v8  ;;  %129 = vst [vmem:[#allocation3 + $0x28] sm:$0xf] %v127_v9 }
 0x13c   :  { %v320_v10 = vpop.permute.xlu1 %319  ;;  %v256_v11 = vpop.permute.xlu0 %255 }
 0x13d   :  { %v259_v12 = vsel %vm121_vm11, %v254_v55, %v256_v11  ;;  %v260_v13 = vsel %vm121_vm11, %v256_v11, %v258_v38 }
 0x13e   :  { %v263_v15 = vsel %vm847_vm12, %v259_v12, 0.0  ;;  %v264_v16 = vsel %vm853_vm13, %v260_v13, 0.0 }
 0x13f   :  { %265 = vst [vmem:[#allocation3 + $0x30] sm:$0xf] %v263_v15  ;;  %266 = vst [vmem:[#allocation3 + $0x38] sm:$0xf] %v264_v16 }
 0x140   :  { %v107_v18 = vpop.permute.xlu1 %106  ;;  %v103_v19 = vpop.permute.xlu0 %102 }
 0x141   :  { %v110_v20 = vsel %vm108_vm8, %v105_v39, %v107_v18  ;;  %v109_v21 = vsel %vm108_vm8, %v103_v19, %v105_v39 }
 0x142   :  { %114 = vst [vmem:[#allocation3 + $0x8] sm:$0xf0] %v110_v20  ;;  %113 = vst [vmem:[#allocation3] sm:$0xf0] %v109_v21 }
 0x144   :  { %v338_v22 = vpop.permute.xlu1 %337  ;;  %v302_v23 = vpop.permute.xlu0 %301 }
 0x145   :  { %v340_v24 = vsel %vm206_vm10, %v827_v47, %v338_v22  ;;  %v305_v25 = vsel %vm170_vm14, %v300_v57, %v302_v23  ;;  %v306_v26 = vsel %vm170_vm14, %v302_v23, %v815_v40 }
 0x146   :  { %344 = vst [vmem:[#allocation3 + $0x78] sm:$0xf0] %v340_v24  ;;  %v309_v27 = vsel %vm847_vm12, %v305_v25, 0.0  ;;  %v310_v28 = vsel %vm853_vm13, %v306_v26, 0.0  ;;  %v367_v30 = vld [vmem:[#allocation3 + $0x38] sm:$0xff] }
 0x147   :  { %v313_v31 = vrot.slane %v309_v27, 4  ;;  %v314_v35 = vrot.slane %v310_v28, 4  ;;  %v581_v36 = vpack.c.bf16 %v367_v30, %v363_v29 }
 0x148   :  { %v188_v38 = vpop.permute.xlu0 %187  ;;  %v133_v39 = vpop.permute.xlu1 %132 }
 0x149   :  { %317 = vst [vmem:[#allocation3 + $0x50] sm:$0xf0] %v313_v31  ;;  %318 = vst [vmem:[#allocation3 + $0x58] sm:$0xf0] %v314_v35  ;;  %v192_v40 = vsel %vm191_vm15, %v823_v45, %v188_v38  ;;  %v193_v41 = vsel %vm191_vm15, %v188_v38, %v817_v42  ;;  %v137_v50 = vsel %vm136_vm9, %v813_v37, %v133_v39  ;;  %582 = vmatprep.subr.bf16.mxu1 %v581_v36  ;;  %v361_v9 = vld [vmem:[#allocation3 + $0x8] sm:$0xff] }
 0x14a   :  { %v138_v53 = vsel %vm136_vm9, %v133_v39, %v809_v33  ;;  %v196_v54 = vsel %vm723_vm6, %v192_v40, 0.0  ;;  %v197_v55 = vsel %vm733_vm7, %v193_v41, 0.0  ;;  %v141_v56 = vsel %vm723_vm6, %v137_v50, 0.0 }
 0x14b   :  { %v142_v45 = vsel %vm733_vm7, %v138_v53, 0.0  ;;  %198 = vst [vmem:[#allocation3 + $0x60] sm:$0xf] %v196_v54  ;;  %199 = vst [vmem:[#allocation3 + $0x68] sm:$0xf] %v197_v55  ;;  %v145_v42 = vrot.slane %v141_v56, 4 }
 0x14c   :  { %v146_v37 = vrot.slane %v142_v45, 4  ;;  %v322_v57 = vpop.permute.xlu0 %321  ;;  %v167_v58 = vpop.permute.xlu1 %166 }
 0x14d   :  { %149 = vst [vmem:[#allocation3 + $0x20] sm:$0xf0] %v145_v42  ;;  %v325_v33 = vsel %vm191_vm15, %v320_v10, %v322_v57  ;;  %v326_v59 = vsel %vm191_vm15, %v322_v57, %v821_v44  ;;  %v171_v60 = vsel %vm170_vm14, %v819_v43, %v167_v58  ;;  %v172_v61 = vsel %vm170_vm14, %v167_v58, %v807_v32 }
 0x14e   :  { %150 = vst [vmem:[#allocation3 + $0x28] sm:$0xf0] %v146_v37  ;;  %v329_v62 = vsel %vm723_vm6, %v325_v33, 0.0  ;;  %v330_v63 = vsel %vm733_vm7, %v326_v59, 0.0  ;;  %v175_v0 = vsel %vm847_vm12, %v171_v60, 0.0  ;;  %v176_v5 = vsel %vm853_vm13, %v172_v61, 0.0 }
 0x14f   :  { %331 = vst [vmem:[#allocation3 + $0x70] sm:$0xf] %v329_v62  ;;  %332 = vst [vmem:[#allocation3 + $0x78] sm:$0xf] %v330_v63  ;;  %v179_v44 = vrot.slane %v175_v0, 4  ;;  %v180_v6 = vrot.slane %v176_v5, 4 }
 0x150   :  { %v154_v43 = vpop.permute.xlu0 %153  ;;  %v242_v4 = vpop.permute.xlu1 %241 }
 0x151   :  { %183 = vst [vmem:[#allocation3 + $0x40] sm:$0xf0] %v179_v44  ;;  %184 = vst [vmem:[#allocation3 + $0x48] sm:$0xf0] %v180_v6  ;;  %v158_v14 = vsel %vm157_vm0, %v831_v49, %v154_v43  ;;  %v159_v17 = vsel %vm157_vm0, %v154_v43, %v825_v46  ;;  %v247_v32 = vsel %vm108_vm8, %v242_v4, %v835_v52  ;;  %v360_v52 = vld [vmem:[#allocation3] sm:$0xff] }
 0x152   :  { %162 = vst [vmem:[#allocation3 + $0x40] sm:$0xf] %v158_v14  ;;  %163 = vst [vmem:[#allocation3 + $0x48] sm:$0xf] %v159_v17 }
 0x153   :  { %251 = vst [vmem:[#allocation3 + $0x10] sm:$0xf0] %v247_v32 }
 0x154   :  { %v216_v7 = vpop.permute.xlu0 %215  ;;  %v290_v8 = vpop.permute.xlu1 %289  ;;  %v364_v11 = vld [vmem:[#allocation3 + $0x20] sm:$0xff] }
 0x155   :  { %v365_v10 = vld [vmem:[#allocation3 + $0x28] sm:$0xff]  ;;  %v221_v12 = vsel %vm219_vm1, %v216_v7, %v829_v48  ;;  %v293_v49 = vsel %vm157_vm0, %v833_v51, %v290_v8  ;;  %v294_v46 = vsel %vm157_vm0, %v290_v8, %v811_v34  ;;  %v575_v16 = vpack.c.bf16 %v364_v11, %v360_v52  ;;  %v366_v48 = vld [vmem:[#allocation3 + $0x30] sm:$0xff] }
 0x156   :  { %v573_v13 = vpack.c.bf16 %v365_v10, %v361_v9  ;;  %v225_v15 = vsel %vm853_vm13, %v221_v12, 0.0  ;;  %297 = vst [vmem:[#allocation3 + $0x50] sm:$0xf] %v293_v49  ;;  %298 = vst [vmem:[#allocation3 + $0x58] sm:$0xf] %v294_v46  ;;  %v373_v34 = vld [vmem:[#allocation3 + $0x68] sm:$0xff] }
 0x157   :  { %227 = vst [vmem:[#allocation3 + $0x88] sm:$0xf] %v225_v15  ;;  %v375_v29 = vld [vmem:[#allocation3 + $0x78] sm:$0xff] }
 0x158   :  { %574 = vmatprep.subr.bf16.mxu0 %v573_v13  ;;  %v348_v18 = vpop.permute.xlu0 %347  ;;  %v201_v19 = vpop.permute.xlu1 %200 }
 0x159   :  { %576 = vmatpush1.bf16.msra.mxu0 %v575_v16  ;;  %v207_v51 = vsel %vm206_vm10, %v201_v19, %v857_v3  ;;  %v369_v21 = vld [vmem:[#allocation3 + $0x48] sm:$0xff]  ;;  %v368_v36 = vld [vmem:[#allocation3 + $0x40] sm:$0xff] }
 0x15a   :  { %v362_v20 = vld [vmem:[#allocation3 + $0x10] sm:$0xff]  ;;  %211 = vst [vmem:[#allocation3 + $0x60] sm:$0xf0] %v207_v51  ;;  %v577_v23 = vpack.c.bf16 %v373_v34, %v369_v21 }
 0x15b   :  { %v583_v22 = vpack.c.bf16 %v366_v48, %v362_v20 }
 0x15c   :  { %v214_v24 = vpop.permute.xlu0 %213  ;;  %v334_v25 = vpop.permute.xlu1 %333  ;;  %578 = vmatprep.subr.bf16.mxu0 %v577_v23 }
 0x15d   :  { %584 = vmatpush1.bf16.msra.mxu1 %v583_v22  ;;  %v220_v26 = vsel %vm219_vm1, %v214_v24, %v216_v7  ;;  %v339_v27 = vsel %vm206_vm10, %v334_v25, %v827_v47  ;;  %v371_v28 = vld [vmem:[#allocation3 + $0x58] sm:$0xff]  ;;  %v370_v53 = vld [vmem:[#allocation3 + $0x50] sm:$0xff] }
 0x15e   :  { %v224_v3 = vsel %vm847_vm12, %v220_v26, 0.0  ;;  %343 = vst [vmem:[#allocation3 + $0x70] sm:$0xf0] %v339_v27  ;;  %v585_v30 = vpack.c.bf16 %v375_v29, %v371_v28  ;;  %v377_v41 = vld [vmem:[#allocation3 + $0x88] sm:$0xf] }
 0x15f   :  { %226 = vst [vmem:[#allocation3 + $0x80] sm:$0xf] %v224_v3 }
 0x160   :  { %586 = vmatprep.subr.bf16.mxu1 %v585_v30  ;;  %v350_v31 = vpop.permute.xlu1 %349 }
 0x161   :  { %v352_v35 = vsel %vm219_vm1, %v348_v18, %v350_v31  ;;  %v372_v38 = vld [vmem:[#allocation3 + $0x60] sm:$0xff] }
 0x162   :  { %v356_v39 = vsel %vm853_vm13, %v352_v35, 0.0  ;;  %v579_v40 = vpack.c.bf16 %v372_v38, %v368_v36 }
 0x163   :  { %358 = vst [vmem:[#allocation3 + $0x98] sm:$0xf] %v356_v39 }
 0x164   :  { %v346_v47 = vpop.permute.xlu1 %345  ;;  %580 = vmatpush1.bf16.msra.mxu0 %v579_v40 }
 0x165   :  { %v351_v50 = vsel %vm219_vm1, %v346_v47, %v348_v18  ;;  %567 = vmatprep.subr.msk.mxu0 %vm390_vm2, %v377_v41  ;;  %v374_v54 = vld [vmem:[#allocation3 + $0x70] sm:$0xff] }
 0x166   :  { %v355_v55 = vsel %vm847_vm12, %v351_v50, 0.0  ;;  %v376_v56 = vld [vmem:[#allocation3 + $0x80] sm:$0xf]  ;;  %v587_v45 = vpack.c.bf16 %v374_v54, %v370_v53 }
 0x167   :  { %357 = vst [vmem:[#allocation3 + $0x90] sm:$0xf] %v355_v55 }
 0x168   :  { %568 = vmatpush1.msk.msra.mxu0 %vm390_vm2, %v376_v56  ;;  %588 = vmatpush1.bf16.msra.mxu1 %v587_v45 }
 0x169   :  { %569 = vmatmul.mubr.msk.f32.vlgmr.msra.gmra.mrb[0].mxu0 %vm386_vm3, %v359_v2 }
 0x16a   :  { %v379_v42 = vld [vmem:[#allocation3 + $0x98] sm:$0xf] }
 0x16b   :  { %570 = vmatprep.subr.msk.mxu1 %vm390_vm2, %v379_v42 }
 0x16d   :  { %v384_v1 = vpop.permute.xlu0 %383 }
 0x16e   :  { %v378_v37 = vld [vmem:[#allocation3 + $0x90] sm:$0xf] }
 0x16f   :  { %571 = vmatpush1.msk.msra.mxu1 %vm390_vm2, %v378_v37 }
 0x170   :  { %572 = vmatmul.mubr.msk.f32.vlgmr.msra.gmra.mrb[0].mxu1 %vm386_vm3, %v359_v2 }
 0x23c   :  { %v469_v57 = vpop.f32.mrb[0].mxu0 }
 0x23d   :  { %v470_v58 = vadd.f32 %v469_v57, %v384_v1  ;;  %v471_v33 = vpop.f32.mrb[1].mxu0 }
 0x23e   :  { %v472_v59 = vadd.f32 %v471_v33, %v384_v1 }
 0x23f   :  { %545 = vst [vmem:[#allocation7] sm:$0xff] %v470_v58 }
 0x240   :  { %546 = vst [vmem:[#allocation7 + $0x8] sm:$0xff] %v472_v59 }
 0x243   :  { %v540_v60 = vpop.f32.mrb[0].mxu1 }
 0x244   :  { %v541_v61 = vadd.f32 %v540_v60, %v384_v1  ;;  %v542_v62 = vpop.f32.mrb[1].mxu1 }
 0x245   :  { %v543_v63 = vadd.f32 %v542_v62, %v384_v1 }
 0x246   :  { %548 = vst [vmem:[#allocation7 + $0x10] sm:$0xff] %v541_v61 }
 0x247   :  { %549 = vst [vmem:[#allocation7 + $0x18] sm:$0xff] %v543_v63 }
 0x248   :  { %646 = shalt.err (!%p643_p12)
}
 0x249   :  { %s647_s14 = scalar_lea.hbm %s964_s3, 512 }
 0x24a   :  { %p648_p13 = scmp.ne.s32.totalorder %s964_s3, %s647_s14  ;;  %p651_p0 = scmp.lt.u32.totalorder %s647_s14, %s964_s3 }
 0x24c   :  { %p653_p1 = pnand %p651_p0, %p648_p13 }
 0x24e   :  { %656 = shalt.err (!%p653_p1)
}
 0x24f   :  { %s676_s19 = smov 256   ;;  %s677_s20 = smov 16  }
 0x250   :  { %561 = dma.vmem_to_hbm [thread:$0]  %s556_s10, 512, %s964_s3, [#allocation6], %s676_s19, %s676_s19, %s677_s20  }
 0x251   :  { %659 = dma.done.wait [#allocation6], 512  }
 0x252   :  { %660 = vsyncadd [#allocation6], 4294966784 }
 0x253   :  { %565 = vsyncpa [#allocation5], 1 }
 0x254   :  { %566 = vsyncpa [#allocation6], 1 }

</bundles_post_ra>
